<compile_context>
chip_gen: v5e
topology: v5e:2x2
jax: 0.10.0
libtpu: 0.0.40
codegen_flags: <defaults>
</compile_context>

<pallas_src>
import functools

import jax
import jax.numpy as jnp
from jax.experimental import pallas as pl
from jax.experimental.pallas import tpu as pltpu


_LANE_CANDIDATES = (4096, 2048, 1024, 512, 256, 128)
_TARGET_TILE_BYTES = 4 * 1024 * 1024   # per-array block; x3 arrays x2 bufs = 24 MiB
_MIN_GRID = 4                          # give both v7x TensorCores work + overlap


def _scale_loss_kernel(logs_ref, t_ref, out_ref, *, inv_b, clip, relative,
                       relative_eps, approx_reciprocal):
    x = logs_ref[...].astype(jnp.float32)
    t = t_ref[...].astype(jnp.float32)
    # softplus(x) = log(1 + exp(x)), numerically stable form (EUP: exp + log).
    sp = jnp.logaddexp(x, 0.0)
    loss = jnp.abs(sp - t)                       # l1_loss(..., reduction='none')
    if clip is not None:
        loss = jnp.clip(loss, clip[0], clip[1])
    loss = loss * inv_b                          # fold 1/b into one VPU multiply
    if relative:
        denom = relative_eps + t
        if approx_reciprocal:
            # v7x option: sheds one exact divide per element so the kernel stays
            # memory-bound rather than EUP-bound at 3.2 TB/s per TC.
            loss = loss * pl.reciprocal(denom, approx=True)
        else:
            loss = loss / denom                  # exact; matches the reference
    out_ref[...] = loss.astype(out_ref.dtype)


def _round_up(x, m):
    return -(-x // m) * m


def _view_2d(logs, t, n, orig_shape, itemsize):
    """Pick a (rows, cols) 2-D view of the flattened data. Zero-copy whenever
    possible (reshape of a contiguous row-major array is a bitcast)."""
    if n % 128 == 0:
        # Lane-dense view: largest width that still leaves >= 8 rows so the
        # grid can be split; fall back to 128 (always divides n here).
        cols = next((w for w in _LANE_CANDIDATES
                     if n % w == 0 and n // w >= 8), 128)
        rows = n // cols
        return logs.reshape(rows, cols), t.reshape(rows, cols), rows, cols, False

    # Not 128-aligned: keep the original trailing dim as the lane axis and use
    # full-last-dim blocks. Zero-copy (no pad/slice passes over HBM), at the
    # cost of partially-masked lane stores when cols < 128.
    cols = orig_shape[-1] if len(orig_shape) >= 2 else n
    if cols * itemsize * 8 <= 16 * 1024 * 1024:
        rows = n // cols
        return logs.reshape(rows, cols), t.reshape(rows, cols), rows, cols, False

    # Pathological fallback: enormous unaligned trailing dim that would not
    # tile into VMEM. One padded copy (rare; keeps the kernel compilable).
    # TODO(synk): could be handled pad-free with a masked final-block store.
    cols = 1024
    rows = pl.cdiv(n, cols)
    pad = rows * cols - n
    lf = jnp.pad(logs.reshape(-1), (0, pad)).reshape(rows, cols)
    tf = jnp.pad(t.reshape(-1), (0, pad)).reshape(rows, cols)
    return lf, tf, rows, cols, True


def scale_loss(logs, t, *, b, clip=None, relative=False, relative_eps=0.1,
               approx_reciprocal=False):
    """Elementwise ScaleLoss forward. Returns an array shaped like `logs`."""
    assert logs.shape == t.shape, "logs and t must have identical shapes"
    orig_shape = logs.shape
    orig_dtype = logs.dtype
    itemsize = jnp.dtype(orig_dtype).itemsize
    n = int(logs.size)

    logs2d, t2d, rows, cols, padded = _view_2d(logs, t, n, orig_shape, itemsize)

    # ---- block sizing (~4 MiB per array, >= _MIN_GRID steps when possible) --
    target_rows = max(8, (_TARGET_TILE_BYTES // (cols * itemsize)) // 8 * 8)
    if rows <= 8:
        block_rows = rows                        # full extent -> always legal
    else:
        block_rows = min(target_rows, rows // 8 * 8)      # multiple of 8
        # Force multiple grid steps so v7x's two TCs both stream HBM and the
        # DMA pipeline has something to overlap with.
        desired = _round_up(max(8, -(-rows // _MIN_GRID)), 8)
        block_rows = max(8, min(block_rows, desired))

    grid = (pl.cdiv(rows, block_rows),)
    block = (block_rows, cols)

    # Explicit VMEM budget: resident (3 arrays x 2 buffers) + headroom, capped
    # so one code path is safe on v5e/v6e (128 MiB) and v7x (64 MiB physical).
    block_bytes = block_rows * cols * itemsize
    resident = 3 * 2 * block_bytes
    vmem_limit = int(min(48 << 20, max(32 << 20, resident + (16 << 20))))

    kernel = functools.partial(
        _scale_loss_kernel,
        inv_b=float(1.0 / b),   # one fp32 rounding vs reference `loss / b`
        clip=None if clip is None else (float(clip[0]), float(clip[1])),
        relative=bool(relative),
        relative_eps=float(relative_eps),
        approx_reciprocal=bool(approx_reciprocal),
    )

    cost = pl.CostEstimate(
        flops=(7 if relative else 6) * n,
        transcendentals=(3 if relative else 2) * n,   # exp + log (+ recip)
        bytes_accessed=3 * n * itemsize,
    )

    out2d = pl.pallas_call(
        kernel,
        out_shape=jax.ShapeDtypeStruct((rows, cols), orig_dtype),
        grid_spec=pltpu.PrefetchScalarGridSpec(
            num_scalar_prefetch=0,
            grid=grid,
            in_specs=[
                pl.BlockSpec(block, lambda i: (i, 0)),
                pl.BlockSpec(block, lambda i: (i, 0)),
            ],
            out_specs=pl.BlockSpec(block, lambda i: (i, 0)),
        ),
        compiler_params=pltpu.CompilerParams(
            dimension_semantics=("parallel",),
            vmem_limit_bytes=vmem_limit,
        ),
        cost_estimate=cost,
    )(logs2d, t2d)

    if padded:
        return out2d.reshape(-1)[:n].reshape(orig_shape)
    return out2d.reshape(orig_shape)


def _reference(logs, t, *, b, clip=None, relative=False, relative_eps=0.1):
    loss = jnp.abs(jax.nn.softplus(logs) - t)
    if clip is not None:
        loss = jnp.clip(loss, clip[0], clip[1])
    loss = loss / b
    if relative:
        loss = loss / (relative_eps + t)
    return loss


if __name__ == "__main__":
    key = jax.random.PRNGKey(0)
    k1, k2 = jax.random.split(key)

    # Small NCHW field-like inputs: batch=2, channels=4, spatial=16x16.
    logs = jax.random.normal(k1, (2, 4, 16, 16), dtype=jnp.float32)
    t = jax.random.uniform(k2, (2, 4, 16, 16), dtype=jnp.float32,
                           minval=0.1, maxval=3.0)

    # Deterministic module hyper-parameters (from __init__ signature).
    b = 1.5
    clip = (0.0, 5.0)
    relative = True
    relative_eps = 0.1

    out = scale_loss(logs, t, b=b, clip=clip,
                     relative=relative, relative_eps=relative_eps)
    out = jax.block_until_ready(out)

    ref = _reference(logs, t, b=b, clip=clip,
                     relative=relative, relative_eps=relative_eps)

    assert out.shape == logs.shape and out.dtype == logs.dtype
    assert jnp.allclose(out, ref, atol=1e-5, rtol=1e-5), "mismatch vs reference"
    print("KERNEL_OK")
</pallas_src>

<mosaic_0001>
module attributes {stable_mosaic.version = 11 : i64} {
  func.func @_scale_loss_kernel(%arg0: i32, %arg1: memref<8x256xf32, #tpu.memory_space<vmem>>, %arg2: memref<8x256xf32, #tpu.memory_space<vmem>>, %arg3: memref<8x256xf32, #tpu.memory_space<vmem>>) attributes {dimension_semantics = [#tpu.dimension_semantics<parallel>], iteration_bounds = array<i64: 1>, scalar_prefetch = 0 : i64, scratch_operands = 0 : i64, tpu.core_type = #tpu.core_type<tc>, window_params = [{transform_indices = @transform_0, window_bounds = array<i64: 8, 256>}, {transform_indices = @transform_1, window_bounds = array<i64: 8, 256>}, {transform_indices = @transform_2, window_bounds = array<i64: 8, 256>}]} {
    %c0 = arith.constant 0 : index
    %c0_0 = arith.constant 0 : index
    %0 = vector.load %arg1[%c0, %c0_0] : memref<8x256xf32, #tpu.memory_space<vmem>>, vector<8x256xf32>
    %c0_1 = arith.constant 0 : index
    %c0_2 = arith.constant 0 : index
    %1 = vector.load %arg2[%c0_1, %c0_2] : memref<8x256xf32, #tpu.memory_space<vmem>>, vector<8x256xf32>
    %cst = arith.constant 0.000000e+00 : f32
    %2 = vector.broadcast %cst : f32 to vector<8x256xf32>
    %3 = arith.maximumf %0, %2 : vector<8x256xf32>
    %4 = vector.broadcast %cst : f32 to vector<8x256xf32>
    %5 = arith.subf %0, %4 : vector<8x256xf32>
    %6 = arith.cmpf one, %5, %5 : vector<8x256xf32>
    %7 = vector.broadcast %cst : f32 to vector<8x256xf32>
    %8 = arith.addf %0, %7 : vector<8x256xf32>
    %9 = math.absf %5 : vector<8x256xf32>
    %cst_3 = arith.constant 0.000000e+00 : f32
    %10 = vector.broadcast %cst_3 : f32 to vector<8x256xf32>
    %11 = arith.subf %10, %9 : vector<8x256xf32>
    %12 = math.exp %11 : vector<8x256xf32>
    %13 = math.log1p %12 : vector<8x256xf32>
    %14 = arith.addf %3, %13 : vector<8x256xf32>
    %15 = arith.select %6, %8, %14 : vector<8x256xi1>, vector<8x256xf32>
    %16 = arith.subf %15, %1 : vector<8x256xf32>
    %17 = math.absf %16 : vector<8x256xf32>
    %cst_4 = arith.constant 0.000000e+00 : f32
    %cst_5 = arith.constant 5.000000e+00 : f32
    %18 = vector.broadcast %cst_4 : f32 to vector<8x256xf32>
    %19 = arith.maximumf %18, %17 : vector<8x256xf32>
    %20 = vector.broadcast %cst_5 : f32 to vector<8x256xf32>
    %21 = arith.minimumf %20, %19 : vector<8x256xf32>
    %cst_6 = arith.constant 0.666666686 : f32
    %22 = vector.broadcast %cst_6 : f32 to vector<8x256xf32>
    %23 = arith.mulf %21, %22 : vector<8x256xf32>
    %cst_7 = arith.constant 1.000000e-01 : f32
    %24 = vector.broadcast %cst_7 : f32 to vector<8x256xf32>
    %25 = arith.addf %24, %1 : vector<8x256xf32>
    %26 = arith.divf %23, %25 : vector<8x256xf32>
    %c0_8 = arith.constant 0 : index
    %c0_9 = arith.constant 0 : index
    %27 = vector.load %arg3[%c0_8, %c0_9] : memref<8x256xf32, #tpu.memory_space<vmem>>, vector<8x256xf32>
    tpu.vector_store %arg3[%c0_8, %c0_9], %26 {strides = array<i32>} : memref<8x256xf32, #tpu.memory_space<vmem>>, vector<8x256xf32>,
    return
  }
  func.func @transform_0(%arg0: i32) -> (i32, i32) {
    %c0_i32 = arith.constant 0 : i32
    %c0_i32_0 = arith.constant 0 : i32
    return %arg0, %c0_i32 : i32, i32
  }
  func.func @transform_1(%arg0: i32) -> (i32, i32) {
    %c0_i32 = arith.constant 0 : i32
    %c0_i32_0 = arith.constant 0 : i32
    return %arg0, %c0_i32 : i32, i32
  }
  func.func @transform_2(%arg0: i32) -> (i32, i32) {
    %c0_i32 = arith.constant 0 : i32
    %c0_i32_0 = arith.constant 0 : i32
    return %arg0, %c0_i32 : i32, i32
  }
}

</mosaic_0001>

<bundles_post_ra>
// kernel: tpu_custom_call.1
= control target key start
LH: loop header
LB: loop body
LE: loop exit
PB: predicated region body
PF: predicated region fallthrough
CT: control target
= control target key end

     0   :  { %7 = vsyncpa [#allocation3], 0  ;;  %s304_s0 = inlined_call_operand.hbm [shape: f32[8,256], index: 0, kind: input, shape index: {}]   ;;  %s305_s1 = inlined_call_operand.hbm [shape: f32[8,256], index: 1, kind: input, shape index: {}]   ;;  %s306_s2 = inlined_call_operand.hbm [shape: f32[8,256], index: 2, kind: output, shape index: {}]  }
   0x1   :  { %8 = vsyncpa [#allocation6], 0 }
   0x2   :  { %9 = vsyncpa [#allocation4], 0  ;;  %s15_s11 = sshll.u32 %s304_s0, 4  ;;  %s235_s12 = smov [#allocation2]   ;;  %s16_s11 = int_to_ptr.hbm [resolvable:$true] %s15_s11 }
   0x3   :  { %s17_s13 = sshll.u32 %s235_s12, 4  ;;  %s26_s16 = sshll.u32 %s305_s1, 4  ;;  %s18_s13 = int_to_ptr.vmem [resolvable:$true] %s17_s13  ;;  %s27_s16 = int_to_ptr.hbm [resolvable:$true] %s26_s16 }
   0x4   :  { %20 = dma.hbm_to_vmem [thread:$0]  %s16_s11, 256, %s18_s13, [#allocation3]  }
   0x5   :  { %s236_s17 = smov [#allocation5]  }
   0x6   :  { %s28_s18 = sshll.u32 %s236_s17, 4  ;;  %s29_s18 = int_to_ptr.vmem [resolvable:$true] %s28_s18 }
   0x7   :  { %31 = dma.hbm_to_vmem [thread:$0]  %s27_s16, 256, %s29_s18, [#allocation6]  }
   0x8   :  { %229 = dma.done.wait [#allocation3], 256  }
   0x9   :  { %230 = vsyncadd [#allocation3], 4294967040 }
   0xa   :  { %231 = dma.done.wait [#allocation6], 256  }
   0xb   :  { %232 = vsyncadd [#allocation6], 4294967040  ;;  %v40_v0 = vld [vmem:[#allocation2] sm:$0xff]  ;;  %v259_v1 = vld [vmem:[#allocation5] sm:$0xff]  ;;  %s237_s0 = smov [#allocation7]   ;;  %s131_s21 = sshll.u32 %s306_s2, 4  ;;  %s132_s21 = int_to_ptr.hbm [resolvable:$true] %s131_s21 }
   0xc   :  { %v41_v2 = vld [vmem:[#allocation2 + $0x8] sm:$0xff]  ;;  %v50_v3 = vand.u32 2147483647, %v40_v0  ;;  %v262_v4 = vadd.f32 0.1, %v259_v1  ;;  %v264_v5 = vld [vmem:[#allocation5 + $0x8] sm:$0xff]  ;;  %vm46_vm2 = vcmp.ne.f32.partialorder %v40_v0, %v40_v0 }
   0xd   :  { %v51_v6 = vand.u32 2147483647, %v41_v2  ;;  %v267_v10 = vadd.f32 0.1, %v264_v5  ;;  %v44_v29 = vmax.f32 %v40_v0, 0.0  ;;  %v45_v34 = vmax.f32 %v41_v2, 0.0 }
   0xe   :  { %v52_v7 = vsub.f32 0.0, %v50_v3  ;;  %145 = vrcp.f32 %v262_v4  ;;  %vm47_vm3 = vcmp.ne.f32.partialorder %v41_v2, %v41_v2  ;;  %vm97_vm4 = vweird.f32 %v262_v4  ;;  %s129_s1 = sshll.u32 %s237_s0, 4  ;;  %s130_s1 = int_to_ptr.vmem [resolvable:$true] %s129_s1 }
   0xf   :  { %v53_v8 = vsub.f32 0.0, %v51_v6  ;;  %v101_v41 = vand.u32 2147483647, %v262_v4  ;;  %v103_v44 = vand.u32 2147483648, %v262_v4  ;;  %vm112_vm6 = vweird.f32 %v267_v10 }
  0x10   :  { %v54_v9 = vmul.f32 1.442695, %v52_v7  ;;  %v118_v48 = vand.u32 2147483648, %v267_v10  ;;  %v116_v52 = vand.u32 2147483647, %v267_v10 }
  0x11   :  { %v56_v11 = vmul.f32 1.442695, %v53_v8  ;;  %v104_v54 = vor.u32 1.1754944e-38, %v103_v44  ;;  %vm102_vm10 = vcmp.eq.f32.partialorder %v101_v41, 8.507059e+37 }
  0x12   :  { %147 = vpow2.f32 %v54_v9  ;;  %v119_v58 = vor.u32 1.1754944e-38, %v118_v48  ;;  %vm117_vm11 = vcmp.eq.f32.partialorder %v116_v52, 8.507059e+37 }
  0x13   :  { %149 = vpow2.f32 %v56_v11 }
  0x14   :  { %151 = vrcp.f32 %v267_v10  ;;  %v271_v12 = vpop.eup %145 }
  0x15   :  { %v93_v21 = vmul.f32 %v271_v12, %v262_v4  ;;  %vm98_vm5 = vweird.f32 %v271_v12 }
  0x16   :  { %vm290_vm8 = vmor %vm97_vm4, %vm98_vm5 }
  0x17   :  { %v94_v27 = vsub.f32 1.0, %v93_v21 }
  0x18   :  { %v148_v13 = vpop.eup %147 }
  0x19   :  { %v150_v14 = vpop.eup %149  ;;  %v58_v15 = vadd.f32 1.0, %v148_v13  ;;  %v61_v16 = vmul.f32 -0.5, %v148_v13  ;;  %v64_v22 = vand.u32 2147483647, %v148_v13  ;;  %v95_v37 = vmul.f32 %v271_v12, %v94_v27 }
  0x1a   :  { %v273_v17 = vpop.eup %151  ;;  %v67_v18 = vadd.f32 1.0, %v150_v14  ;;  %v70_v19 = vmul.f32 -0.5, %v150_v14  ;;  %v73_v25 = vand.u32 2147483647, %v150_v14 }
  0x1b   :  { %153 = vlog2.f32 %v58_v15  ;;  %v62_v20 = vadd.f32 1.0, %v61_v16  ;;  %v108_v24 = vmul.f32 %v273_v17, %v267_v10  ;;  %vm65_vm0 = vcmp.lt.f32.partialorder %v64_v22, 0.0004427343 }
  0x1c   :  { %155 = vlog2.f32 %v67_v18  ;;  %v71_v23 = vadd.f32 1.0, %v70_v19  ;;  %vm74_vm1 = vcmp.lt.f32.partialorder %v73_v25, 0.0004427343  ;;  %vm113_vm7 = vweird.f32 %v273_v17 }
  0x1d   :  { %v63_v26 = vmul.f32 %v148_v13, %v62_v20  ;;  %v109_v31 = vsub.f32 1.0, %v108_v24  ;;  %v96_v46 = vadd.f32 %v271_v12, %v95_v37  ;;  %vm114_vm9 = vmor %vm112_vm6, %vm113_vm7 }
  0x1e   :  { %v72_v30 = vmul.f32 %v150_v14, %v71_v23 }
  0x1f   :  { %v110_v40 = vmul.f32 %v273_v17, %v109_v31  ;;  %v100_v57 = vsel %vm290_vm8, %v271_v12, %v96_v46 }
  0x20   :  { %v105_v62 = vsel %vm102_vm10, %v104_v54, %v100_v57 }
  0x21   :  { %v154_v28 = vpop.eup %153  ;;  %v111_v51 = vadd.f32 %v273_v17, %v110_v40 }
  0x22   :  { %v156_v32 = vpop.eup %155  ;;  %v60_v33 = vmul.f32 0.6931472, %v154_v28 }
  0x23   :  { %v69_v35 = vmul.f32 0.6931472, %v156_v32  ;;  %v115_v60 = vsel %vm114_vm9, %v273_v17, %v111_v51 }
  0x24   :  { %v66_v36 = vsel %vm65_vm0, %v63_v26, %v60_v33 }
  0x25   :  { %v76_v38 = vadd.f32 %v66_v36, %v44_v29  ;;  %v75_v39 = vsel %vm74_vm1, %v72_v30, %v69_v35 }
  0x26   :  { %v77_v42 = vadd.f32 %v75_v39, %v45_v34 }
  0x27   :  { %v78_v43 = vsel %vm46_vm2, %v40_v0, %v76_v38 }
  0x28   :  { %v80_v45 = vsub.f32 %v78_v43, %v259_v1  ;;  %v79_v47 = vsel %vm47_vm3, %v41_v2, %v77_v42  ;;  %v120_v1 = vsel %vm117_vm11, %v119_v58, %v115_v60 }
  0x29   :  { %v81_v50 = vsub.f32 %v79_v47, %v264_v5 }
  0x2a   :  { %v82_v53 = vand.u32 2147483647, %v80_v45 }
  0x2b   :  { %v83_v55 = vand.u32 2147483647, %v81_v50 }
  0x2c   :  { %v84_v56 = vmax.f32 %v82_v53, 0.0 }
  0x2d   :  { %v85_v59 = vmax.f32 %v83_v55, 0.0 }
  0x2e   :  { %v86_v61 = vmin.f32 %v84_v56, 5.0 }
  0x2f   :  { %v87_v63 = vmin.f32 %v85_v59, 5.0 }
  0x30   :  { %v88_v0 = vmul.f32 0.6666667, %v86_v61 }
  0x31   :  { %v89_v2 = vmul.f32 0.6666667, %v87_v63 }
  0x32   :  { %v106_v3 = vmul.f32 %v105_v62, %v88_v0 }
  0x33   :  { %v121_v4 = vmul.f32 %v120_v1, %v89_v2 }
  0x34   :  { %122 = vst [vmem:[#allocation7] sm:$0xff] %v106_v3 }
  0x35   :  { %123 = vst [vmem:[#allocation7 + $0x8] sm:$0xff] %v121_v4 }
  0x36   :  { %134 = dma.vmem_to_hbm [thread:$0]  %s130_s1, 256, %s132_s21, [#allocation4]  }
  0x37   :  { %233 = dma.done.wait [#allocation4], 256  }
  0x38   :  { %234 = vsyncadd [#allocation4], 4294967040 }
  0x39   :  { %139 = vsyncpa [#allocation3], 1 }
  0x3a   :  { %140 = vsyncpa [#allocation6], 1 }
  0x3b   :  { %141 = vsyncpa [#allocation4], 1 }

</bundles_post_ra>
